<compile_context>
chip_gen: v7x
topology: tpu7x:2x2x1
jax: 0.10.0
libtpu: 0.0.40
codegen_flags: <defaults>
</compile_context>

<pallas_src>
import functools

import jax
import jax.numpy as jnp
from jax.experimental import pallas as pl
from jax.experimental.pallas import tpu as pltpu

_MIB = 1024 * 1024


def _round_up(n, m):
    return ((n + m - 1) // m) * m


def _cdiv(a, b):
    return -(-a // b)


def _pick_defaults():
    """Per-generation (TB, TF_max, vmem_cap); conservative if chip is unknown."""
    kind = ""
    try:
        kind = jax.devices()[0].device_kind.lower()
    except Exception:
        pass
    if ("v5" in kind) or ("v6" in kind):
        # 128 MiB physical VMEM: 32 MiB per x buffer.
        return 1024, 8192, 96 * _MIB
    # v7x (64 MiB physical VMEM) or unknown chip: <= 16 MiB per x buffer.
    return 1024, 4096, 48 * _MIB


def _small_f_kernel(x_ref, w_ref, o_ref):
    # x_ref: (TB, F), w_ref: (1, F), o_ref: (1, 1, TB)   -- single feature block
    prod = x_ref[...].astype(jnp.float32) * w_ref[...].astype(jnp.float32)
    o_ref[0] = jnp.sum(prod, axis=1, dtype=jnp.float32)[None, :].astype(o_ref.dtype)


def _reduce_kernel(x_ref, w_ref, o_ref, acc_ref, *, F, TF, w_resident):
    # x_ref  : (TB, TF)   current x tile (last block may be partial in B and F)
    # w_ref  : (1, F_pad) resident weights OR (1, TF) per-feature-block slice
    # o_ref  : (1, 1, TB) lane-dense output tile (written on last feature step)
    # acc_ref: (TB, 128)  f32 accumulator; cross-lane reduce deferred to finalize
    k = pl.program_id(1)

    @pl.when(k == 0)
    def _init():
        acc_ref[...] = jnp.zeros_like(acc_ref)

    if w_resident:
        w = w_ref[:, pl.ds(pl.multiple_of(k * TF, 128), TF)].astype(jnp.float32)
    else:
        w = w_ref[...].astype(jnp.float32)

    tb = x_ref.shape[0]
    f_ragged = (F % TF) != 0
    if f_ragged:
        # Out-of-range feature lanes of the last block are never DMA'd and may
        # hold garbage (NaN/Inf) -> must be masked (zero weights are not enough).
        limit = F - k * TF                                        # traced scalar
        lane = jax.lax.broadcasted_iota(jnp.int32, (tb, 128), 1)  # hoisted

    # Steady state: pure VPU multiply/add on static 128-aligned lane slabs.
    for c in range(TF // 128):
        xs = x_ref[:, c * 128:(c + 1) * 128].astype(jnp.float32)
        ws = w[:, c * 128:(c + 1) * 128]
        p = xs * ws
        if f_ragged:
            p = jnp.where(lane < (limit - c * 128), p, 0.0)
        acc_ref[...] += p

    @pl.when(k == pl.num_programs(1) - 1)
    def _finalize():
        row_sum = jnp.sum(acc_ref[...], axis=1)   # single XLU cross-lane reduce
        o_ref[0] = row_sum[None, :].astype(o_ref.dtype)


def value_function(x, weights, *, tb=None, tf_max=None, vmem_cap=None,
                   small_f_threshold=2048, resident_w_bytes=2 * _MIB):
    """Computes sum(x * weights, axis=1). x: (B, F), weights: (F,) -> (B,)."""
    B, F = x.shape
    assert weights.shape == (F,)
    out_dtype = jnp.result_type(x.dtype, weights.dtype)

    d_tb, d_tf, d_cap = _pick_defaults()
    tb = d_tb if tb is None else tb
    tf_max = d_tf if tf_max is None else tf_max
    vmem_cap = d_cap if vmem_cap is None else vmem_cap
    tb = max(128, _round_up(tb, 128))
    tf_max = max(128, _round_up(tf_max, 128))

    # Batch tiling: fixed tile size, ragged last tile, no padding/copy of x.
    TB = min(tb, _round_up(B, 128))
    num_b = _cdiv(B, TB)
    if num_b == 1 and B > 128:
        # >= 2 batch tiles so the "parallel" axis can shard across v7x's 2 TCs.
        TB = _round_up(_cdiv(B, 2), 128)
        num_b = _cdiv(B, TB)

    w2d = weights.reshape(1, F)
    x_itemsize = jnp.dtype(x.dtype).itemsize
    w_itemsize = jnp.dtype(weights.dtype).itemsize
    out_shape = jax.ShapeDtypeStruct((num_b, 1, TB), out_dtype)

    if F <= small_f_threshold:
        # ---- small-F path: single feature block, direct store, no scratch ----
        need = 2 * TB * F * x_itemsize + 2 * F * w_itemsize + 4 * TB * F + 8 * _MIB
        vmem_limit = int(min(vmem_cap, max(32 * _MIB, need)))
        out = pl.pallas_call(
            _small_f_kernel,
            out_shape=out_shape,
            grid_spec=pltpu.PrefetchScalarGridSpec(
                num_scalar_prefetch=0,
                grid=(num_b,),
                in_specs=[
                    pl.BlockSpec((TB, F), lambda i: (i, 0)),
                    pl.BlockSpec((1, F), lambda i: (0, 0)),
                ],
                out_specs=pl.BlockSpec((1, 1, TB), lambda i: (i, 0, 0)),
            ),
            compiler_params=pltpu.CompilerParams(
                dimension_semantics=("parallel",),
                vmem_limit_bytes=vmem_limit,
            ),
        )(x, w2d)
    else:
        # ---- streaming feature reduction (reduction axis last); x unpadded ----
        TF = min(tf_max, _round_up(F, 128))
        num_f = _cdiv(F, TF)
        F_pad = num_f * TF
        if F_pad != F:
            w2d = jnp.pad(w2d, ((0, 0), (0, F_pad - F)))   # tiny: weights only
        w_resident = (num_f > 1) and (F_pad * w_itemsize <= resident_w_bytes)
        w_bytes = (F_pad if w_resident else TF) * w_itemsize
        need = (2 * TB * TF * x_itemsize + 2 * w_bytes + TB * 128 * 4 + 8 * _MIB)
        vmem_limit = int(min(vmem_cap, max(32 * _MIB, need)))
        if w_resident:
            w_spec = pl.BlockSpec((1, F_pad), lambda i, k: (0, 0))   # fetched once
        else:
            w_spec = pl.BlockSpec((1, TF), lambda i, k: (0, k))
        kernel = functools.partial(_reduce_kernel, F=F, TF=TF, w_resident=w_resident)
        out = pl.pallas_call(
            kernel,
            out_shape=out_shape,
            grid_spec=pltpu.PrefetchScalarGridSpec(
                num_scalar_prefetch=0,
                grid=(num_b, num_f),            # reduction (feature) axis last
                in_specs=[
                    pl.BlockSpec((TB, TF), lambda i, k: (i, k)),
                    w_spec,
                ],
                out_specs=pl.BlockSpec((1, 1, TB), lambda i, k: (i, 0, 0)),
                scratch_shapes=[pltpu.VMEM((TB, 128), jnp.float32)],
            ),
            compiler_params=pltpu.CompilerParams(
                dimension_semantics=("parallel", "arbitrary"),
                vmem_limit_bytes=vmem_limit,
            ),
        )(x, w2d)

    return out.reshape(-1)[:B]


if __name__ == "__main__":
    key = jax.random.PRNGKey(0)
    k_x, k_w, k_x2, k_w2, k_x3, k_w3 = jax.random.split(key, 6)

    # 1) Small shapes matching the module (TestValueFunction(features=32), batch=8).
    batch, features = 8, 32
    weights = jax.random.uniform(k_w, (features,), dtype=jnp.float32)   # ~ torch.rand
    x = jax.random.normal(k_x, (batch, features), dtype=jnp.float32)
    out = jax.block_until_ready(value_function(x, weights))
    ref = jnp.sum(x * weights[None, :], axis=1)
    assert out.shape == (batch,)
    assert jnp.allclose(out, ref, atol=1e-5, rtol=1e-5)

    # 2) Reduction path, single feature block, ragged batch (no padding of x).
    batch2, features2 = 260, 2304
    weights2 = jax.random.uniform(k_w2, (features2,), dtype=jnp.float32)
    x2 = jax.random.normal(k_x2, (batch2, features2), dtype=jnp.float32)
    out2 = jax.block_until_ready(value_function(x2, weights2))
    ref2 = jnp.sum(x2 * weights2[None, :], axis=1)
    assert out2.shape == (batch2,)
    assert jnp.allclose(out2, ref2, atol=1e-3, rtol=1e-3)

    # 3) Multi-step feature reduction: ragged feature tail (in-kernel lane mask),
    #    VMEM-resident weights, ragged batch tail, >= 2 batch tiles.
    batch3, features3 = 260, 9000
    weights3 = jax.random.uniform(k_w3, (features3,), dtype=jnp.float32)
    x3 = jax.random.normal(k_x3, (batch3, features3), dtype=jnp.float32)
    out3 = jax.block_until_ready(value_function(x3, weights3, tf_max=4096))
    ref3 = jnp.sum(x3 * weights3[None, :], axis=1)
    assert out3.shape == (batch3,)
    assert jnp.allclose(out3, ref3, atol=1e-2, rtol=1e-3)

    print("KERNEL_OK")
</pallas_src>

<mosaic_0001>
module attributes {stable_mosaic.version = 11 : i64} {
  func.func @_small_f_kernel(%arg0: i32, %arg1: memref<128x32xf32, #tpu.memory_space<vmem>>, %arg2: memref<1x32xf32, #tpu.memory_space<vmem>>, %arg3: memref<1x1x128xf32, #tpu.memory_space<vmem>>) attributes {dimension_semantics = [#tpu.dimension_semantics<parallel>], iteration_bounds = array<i64: 1>, scalar_prefetch = 0 : i64, scratch_operands = 0 : i64, tpu.core_type = #tpu.core_type<tc>, window_params = [{transform_indices = @transform_0, window_bounds = array<i64: 128, 32>}, {pipeline_mode = #tpu.pipeline_mode<synchronous>, transform_indices = @transform_1, window_bounds = array<i64: 1, 32>}, {transform_indices = @transform_2, window_bounds = array<i64: 1, 1, 128>}]} {
    %c0 = arith.constant 0 : index
    %c0_0 = arith.constant 0 : index
    %0 = vector.load %arg1[%c0, %c0_0] : memref<128x32xf32, #tpu.memory_space<vmem>>, vector<128x32xf32>
    %c0_1 = arith.constant 0 : index
    %c0_2 = arith.constant 0 : index
    %1 = vector.load %arg2[%c0_1, %c0_2] : memref<1x32xf32, #tpu.memory_space<vmem>>, vector<1x32xf32>
    %2 = vector.broadcast %1 : vector<1x32xf32> to vector<128x32xf32>
    %3 = arith.mulf %0, %2 : vector<128x32xf32>
    %cst = arith.constant dense<0.000000e+00> : vector<128xf32>
    %4 = vector.multi_reduction <add>, %3, %cst [1] : vector<128x32xf32> to vector<128xf32>
    %5 = vector.shape_cast %4 : vector<128xf32> to vector<1x128xf32>
    %c0_3 = arith.constant 0 : index
    %c0_4 = arith.constant 0 : index
    %c0_5 = arith.constant 0 : index
    %6 = vector.load %arg3[%c0_3, %c0_4, %c0_5] : memref<1x1x128xf32, #tpu.memory_space<vmem>>, vector<1x1x128xf32>
    %7 = vector.shape_cast %6 : vector<1x1x128xf32> to vector<1x128xf32>
    %8 = vector.shape_cast %5 : vector<1x128xf32> to vector<1x1x128xf32>
    tpu.vector_store %arg3[%c0_3, %c0_4, %c0_5], %8 {strides = array<i32>} : memref<1x1x128xf32, #tpu.memory_space<vmem>>, vector<1x1x128xf32>,
    return
  }
  func.func @transform_0(%arg0: i32) -> (i32, i32) {
    %c0_i32 = arith.constant 0 : i32
    %c0_i32_0 = arith.constant 0 : i32
    return %arg0, %c0_i32 : i32, i32
  }
  func.func @transform_1(%arg0: i32) -> (i32, i32) {
    %c0_i32 = arith.constant 0 : i32
    %c0_i32_0 = arith.constant 0 : i32
    %c0_i32_1 = arith.constant 0 : i32
    return %c0_i32, %c0_i32_0 : i32, i32
  }
  func.func @transform_2(%arg0: i32) -> (i32, i32, i32) {
    %c0_i32 = arith.constant 0 : i32
    %c0_i32_0 = arith.constant 0 : i32
    %c0_i32_1 = arith.constant 0 : i32
    return %arg0, %c0_i32, %c0_i32_0 : i32, i32, i32
  }
}

</mosaic_0001>

<bundles_post_ra>
// kernel: tpu_custom_call.1
= control target key start
LH: loop header
LB: loop body
LE: loop exit
PB: predicated region body
PF: predicated region fallthrough
CT: control target
= control target key end

     0   :  { %7 = vsyncpa [#allocation3], 0  ;;  %s409_s0 = inlined_call_operand.hbm [shape: f32[8,32], index: 0, kind: input, shape index: {}]   ;;  %s410_s1 = inlined_call_operand.vmem [shape: f32[1,32], index: 1, kind: input, shape index: {}]   ;;  %s411_s2 = inlined_call_operand.hbm [shape: f32[1,1,128], index: 2, kind: output, shape index: {}]  }
   0x1   :  { %8 = vsyncpa [#allocation4], 0 }
   0x2   :  { %13 = vsyncadd [#allocation3], 1920  ;;  %s311_s9 = smov [#allocation2]   ;;  %s263_s13 = scalar_lea.hbm %s409_s0, 128 }
   0x3   :  { %s14_s10 = sshll.u32 %s311_s9, 4  ;;  %p264_p0 = scmp.ne.s32.totalorder %s409_s0, %s263_s13  ;;  %s15_s10 = int_to_ptr.vmem [resolvable:$true] %s14_s10 }
   0x4   :  { %p267_p1 = scmp.lt.u32.totalorder %s263_s13, %s409_s0 }
   0x6   :  { %p269_p2 = pnand %p267_p1, %p264_p0 }
   0x8   :  { %272 = shalt.err (!%p269_p2)
}
   0x9   :  { %s273_s18 = scalar_lea.vmem %s15_s10, 128  ;;  %s277_s19 = scalar_lea.vmem %s15_s10, 2048 }
   0xa   :  { %p274_p3 = scmp.ne.s32.totalorder %s15_s10, %s273_s18  ;;  %p278_p4 = scmp.lt.s32.totalorder %s15_s10, %s15_s10 }
   0xb   :  { %p279_p5 = scmp.lt.s32.totalorder %s277_s19, %s273_s18 }
   0xd   :  { %p280_p6 = por %p279_p5, %p278_p4 }
   0xf   :  { %p281_p7 = pnand %p280_p6, %p274_p3 }
  0x11   :  { %284 = shalt.err (!%p281_p7)
}
  0x12   :  { %s312_s20 = smov 128   ;;  %s313_s21 = smov 8  }
  0x13   :  { %20 = dma.hbm_to_vmem [thread:$0]  %s409_s0, 128, %s15_s10, [#allocation3], %s312_s20, %s312_s20, %s313_s21  }
  0x14   :  { %307 = dma.done.wait [#allocation3], 2048  }
  0x15   :  { %308 = vsyncadd [#allocation3], 4294965248  ;;  %v26_v0 = vld [vmem:[#allocation2] sm:$0xff]  ;;  %vm65_vm0 = vcmask 261120   ;;  %v28_v2 = vld [vmem:[#allocation2 + $0x10] sm:$0xff]  ;;  %v130_v49 = vlaneseq  ;;  %vm141_vm1 = vcmask 130112  }
  0x16   :  { %v258_v1 = vld [vmem:[%s410_s1] ss:$0 sm:$0xff]  ;;  %v27_v5 = vld [vmem:[#allocation2 + $0x8] sm:$0xff]  ;;  %v29_v6 = vld [vmem:[#allocation2 + $0x18] sm:$0xff]  ;;  %vm148_vm2 = vcmask 195712   ;;  %vm155_vm3 = vcmask 261312  }
  0x17   :  { %v49_v3 = vmul.f32 %v258_v1, %v26_v0  ;;  %v51_v4 = vmul.f32 %v258_v1, %v28_v2  ;;  %v50_v7 = vmul.f32 %v258_v1, %v27_v5  ;;  %v52_v8 = vmul.f32 %v258_v1, %v29_v6  ;;  %v30_v9 = vld [vmem:[#allocation2 + $0x20] sm:$0xff]  ;;  %v31_v10 = vld [vmem:[#allocation2 + $0x28] sm:$0xff]  ;;  %v32_v17 = vld [vmem:[#allocation2 + $0x30] sm:$0xff]  ;;  %s314_s0 = smov [#allocation5]  }
  0x18   :  { %v53_v15 = vmul.f32 %v258_v1, %v30_v9  ;;  %v54_v16 = vmul.f32 %v258_v1, %v31_v10  ;;  %v33_v18 = vld [vmem:[#allocation2 + $0x38] sm:$0xff]  ;;  %v55_v21 = vmul.f32 %v258_v1, %v32_v17  ;;  %v34_v23 = vld [vmem:[#allocation2 + $0x40] sm:$0xff]  ;;  %v35_v24 = vld [vmem:[#allocation2 + $0x48] sm:$0xff]  ;;  %v361_v50 = vand.u32 127, %v130_v49  ;;  %s249_s1 = sshll.u32 %s314_s0, 4  ;;  %s250_s1 = int_to_ptr.vmem [resolvable:$true] %s249_s1 }
  0x19   :  { %v66_v11 = vsel %vm65_vm0, %v49_v3, 0.0  ;;  %v72_v12 = vsel %vm65_vm0, %v51_v4, 0.0  ;;  %v69_v13 = vsel %vm65_vm0, %v50_v7, 0.0  ;;  %v75_v14 = vsel %vm65_vm0, %v52_v8, 0.0  ;;  %v36_v29 = vld [vmem:[#allocation2 + $0x50] sm:$0xff]  ;;  %v37_v30 = vld [vmem:[#allocation2 + $0x58] sm:$0xff]  ;;  %p290_p9 = scmp.lt.s32.totalorder %s250_s1, %s250_s1 }
  0x1a   :  { %67 = vadd.xlane.f32.xlu0 %v66_v11  ;;  %73 = vadd.xlane.f32.xlu1 %v72_v12  ;;  %v78_v19 = vsel %vm65_vm0, %v53_v15, 0.0  ;;  %v81_v20 = vsel %vm65_vm0, %v54_v16, 0.0  ;;  %v56_v22 = vmul.f32 %v258_v1, %v33_v18  ;;  %v84_v25 = vsel %vm65_vm0, %v55_v21, 0.0  ;;  %v38_v35 = vld [vmem:[#allocation2 + $0x60] sm:$0xff]  ;;  %v39_v36 = vld [vmem:[#allocation2 + $0x68] sm:$0xff]  ;;  %v40_v41 = vld [vmem:[#allocation2 + $0x70] sm:$0xff] }
  0x1b   :  { %v57_v27 = vmul.f32 %v258_v1, %v34_v23  ;;  %v58_v28 = vmul.f32 %v258_v1, %v35_v24  ;;  %v59_v33 = vmul.f32 %v258_v1, %v36_v29  ;;  %v60_v34 = vmul.f32 %v258_v1, %v37_v30  ;;  %v41_v42 = vld [vmem:[#allocation2 + $0x78] sm:$0xff]  ;;  %s285_s26 = scalar_lea.vmem %s250_s1, 16  ;;  %s289_s27 = scalar_lea.vmem %s250_s1, 32 }
  0x1c   :  { %v87_v26 = vsel %vm65_vm0, %v56_v22, 0.0  ;;  %v61_v39 = vmul.f32 %v258_v1, %v38_v35  ;;  %v62_v40 = vmul.f32 %v258_v1, %v39_v36  ;;  %v63_v45 = vmul.f32 %v258_v1, %v40_v41  ;;  %p286_p8 = scmp.ne.s32.totalorder %s250_s1, %s285_s26  ;;  %p291_p10 = scmp.lt.s32.totalorder %s289_s27, %s285_s26 }
  0x1d   :  { %v90_v31 = vsel %vm65_vm0, %v57_v27, 0.0  ;;  %v93_v32 = vsel %vm65_vm0, %v58_v28, 0.0  ;;  %v96_v37 = vsel %vm65_vm0, %v59_v33, 0.0  ;;  %v99_v38 = vsel %vm65_vm0, %v60_v34, 0.0 }
  0x1e   :  { %70 = vadd.xlane.f32.xlu0 %v69_v13  ;;  %76 = vadd.xlane.f32.xlu1 %v75_v14  ;;  %v102_v43 = vsel %vm65_vm0, %v61_v39, 0.0  ;;  %v105_v44 = vsel %vm65_vm0, %v62_v40, 0.0  ;;  %v64_v46 = vmul.f32 %v258_v1, %v41_v42  ;;  %v108_v47 = vsel %vm65_vm0, %v63_v45, 0.0  ;;  %p292_p11 = por %p291_p10, %p290_p9 }
  0x1f   :  { %v363_v51 = vshrl.u32 %v130_v49, 7  ;;  %v136_v52 = vadd.s32 4294967288, %v361_v50  ;;  %v150_v53 = vadd.s32 4294967272, %v361_v50  ;;  %v143_v54 = vadd.s32 4294967280, %v361_v50 }
  0x20   :  { %v111_v48 = vsel %vm65_vm0, %v64_v46, 0.0  ;;  %v157_v57 = vadd.s32 4294967264, %v361_v50  ;;  %v164_v62 = vadd.s32 4294967256, %v361_v50  ;;  %v171_v5 = vadd.s32 4294967248, %v361_v50  ;;  %p293_p12 = pnand %p292_p11, %p286_p8 }
  0x21   :  { %v134_v58 = vsub.s32 %v361_v50, %v363_v51  ;;  %v139_v59 = vsub.s32 %v136_v52, %v363_v51  ;;  %v153_v60 = vsub.s32 %v150_v53, %v363_v51  ;;  %v146_v61 = vsub.s32 %v143_v54, %v363_v51 }
  0x22   :  { %79 = vadd.xlane.f32.xlu0 %v78_v19  ;;  %82 = vadd.xlane.f32.xlu1 %v81_v20  ;;  %v160_v1 = vsub.s32 %v157_v57, %v363_v51  ;;  %v167_v7 = vsub.s32 %v164_v62, %v363_v51  ;;  %v178_v8 = vadd.s32 4294967240, %v361_v50  ;;  %vm162_vm4 = vcmask 326912  }
  0x23   :  { %v174_v15 = vsub.s32 %v171_v5, %v363_v51  ;;  %v185_v16 = vadd.s32 4294967232, %v361_v50  ;;  %v192_v19 = vadd.s32 4294967224, %v361_v50  ;;  %vm169_vm5 = vcmask 392512  }
  0x24   :  { %v181_v18 = vsub.s32 %v178_v8, %v363_v51  ;;  %vm176_vm6 = vcmask 458112   ;;  %v206_v29 = vadd.s32 4294967208, %v361_v50  ;;  %vm183_vm7 = vcmask 523712  }
  0x25   :  { %v188_v24 = vsub.s32 %v185_v16, %v363_v51  ;;  %v195_v28 = vsub.s32 %v192_v19, %v363_v51  ;;  %vm190_vm8 = vcmask 589312   ;;  %v213_v35 = vadd.s32 4294967200, %v361_v50 }
  0x26   :  { %85 = vadd.xlane.f32.xlu0 %v84_v25  ;;  %88 = vadd.xlane.f32.xlu1 %v87_v26  ;;  %v199_v25 = vadd.s32 4294967216, %v361_v50  ;;  %v220_v39 = vadd.s32 4294967192, %v361_v50  ;;  %vm197_vm9 = vcmask 654912   ;;  %vm204_vm10 = vcmask 720512  }
  0x27   :  { %v227_v45 = vadd.s32 4294967184, %v361_v50  ;;  %v234_v46 = vadd.s32 4294967176, %v361_v50  ;;  %vm211_vm11 = vcmask 786112   ;;  %vm218_vm12 = vcmask 851712  }
  0x28   :  { %v202_v34 = vsub.s32 %v199_v25, %v363_v51  ;;  %v223_v49 = vsub.s32 %v220_v39, %v363_v51  ;;  %vm225_vm13 = vcmask 917312   ;;  %vm232_vm14 = vcmask 982912  }
  0x29   :  { %v237_v57 = vsub.s32 %v234_v46, %v363_v51  ;;  %vm239_vm15 = vcmask 1048512  }
  0x2a   :  { %91 = vadd.xlane.f32.xlu0 %v90_v31  ;;  %94 = vadd.xlane.f32.xlu1 %v93_v32 }
  0x2e   :  { %97 = vadd.xlane.f32.xlu0 %v96_v37  ;;  %100 = vadd.xlane.f32.xlu1 %v99_v38  ;;  %v209_v38 = vsub.s32 %v206_v29, %v363_v51 }
  0x32   :  { %103 = vadd.xlane.f32.xlu0 %v102_v43  ;;  %106 = vadd.xlane.f32.xlu1 %v105_v44  ;;  %v216_v44 = vsub.s32 %v213_v35, %v363_v51 }
  0x36   :  { %109 = vadd.xlane.f32.xlu0 %v108_v47  ;;  %112 = vadd.xlane.f32.xlu1 %v111_v48 }
  0xa7   :  { %v68_v55 = vpop.xlane.xlu0 %67  ;;  %v74_v56 = vpop.xlane.xlu1 %73 }
  0xa8   :  { %v135_v2 = vrot.slane %v68_v55, %v134_v58  ;;  %v147_v6 = vrot.slane %v74_v56, %v146_v61  ;;  %v230_v56 = vsub.s32 %v227_v45, %v363_v51 }
  0xab   :  { %v71_v63 = vpop.xlane.xlu0 %70  ;;  %v77_v0 = vpop.xlane.xlu1 %76 }
  0xac   :  { %v140_v3 = vrot.slane %v71_v63, %v139_v59  ;;  %v154_v4 = vrot.slane %v77_v0, %v153_v60 }
  0xae   :  { %v142_v9 = vsel %vm141_vm1, %v140_v3, %v135_v2 }
  0xaf   :  { %v149_v10 = vsel %vm148_vm2, %v147_v6, %v142_v9  ;;  %v80_v11 = vpop.xlane.xlu0 %79  ;;  %v83_v12 = vpop.xlane.xlu1 %82 }
  0xb0   :  { %v156_v13 = vsel %vm155_vm3, %v154_v4, %v149_v10  ;;  %v161_v14 = vrot.slane %v80_v11, %v160_v1  ;;  %v168_v17 = vrot.slane %v83_v12, %v167_v7 }
  0xb2   :  { %v163_v20 = vsel %vm162_vm4, %v161_v14, %v156_v13 }
  0xb3   :  { %v86_v21 = vpop.xlane.xlu0 %85  ;;  %v89_v22 = vpop.xlane.xlu1 %88  ;;  %v170_v26 = vsel %vm169_vm5, %v168_v17, %v163_v20 }
  0xb4   :  { %v175_v23 = vrot.slane %v86_v21, %v174_v15  ;;  %v182_v27 = vrot.slane %v89_v22, %v181_v18 }
  0xb6   :  { %v177_v30 = vsel %vm176_vm6, %v175_v23, %v170_v26 }
  0xb7   :  { %v92_v31 = vpop.xlane.xlu0 %91  ;;  %v95_v32 = vpop.xlane.xlu1 %94  ;;  %v184_v36 = vsel %vm183_vm7, %v182_v27, %v177_v30 }
  0xb8   :  { %v189_v33 = vrot.slane %v92_v31, %v188_v24  ;;  %v196_v37 = vrot.slane %v95_v32, %v195_v28 }
  0xba   :  { %v191_v40 = vsel %vm190_vm8, %v189_v33, %v184_v36 }
  0xbb   :  { %v98_v41 = vpop.xlane.xlu0 %97  ;;  %v101_v42 = vpop.xlane.xlu1 %100  ;;  %v198_v47 = vsel %vm197_vm9, %v196_v37, %v191_v40 }
  0xbc   :  { %v203_v43 = vrot.slane %v98_v41, %v202_v34  ;;  %v210_v48 = vrot.slane %v101_v42, %v209_v38 }
  0xbe   :  { %v205_v52 = vsel %vm204_vm10, %v203_v43, %v198_v47 }
  0xbf   :  { %v104_v53 = vpop.xlane.xlu0 %103  ;;  %v107_v54 = vpop.xlane.xlu1 %106  ;;  %v212_v58 = vsel %vm211_vm11, %v210_v48, %v205_v52 }
  0xc0   :  { %v217_v55 = vrot.slane %v104_v53, %v216_v44  ;;  %v224_v59 = vrot.slane %v107_v54, %v223_v49 }
  0xc2   :  { %v219_v60 = vsel %vm218_vm12, %v217_v55, %v212_v58 }
  0xc3   :  { %v110_v61 = vpop.xlane.xlu0 %109  ;;  %v113_v50 = vpop.xlane.xlu1 %112  ;;  %v226_v0 = vsel %vm225_vm13, %v224_v59, %v219_v60 }
  0xc4   :  { %v231_v62 = vrot.slane %v110_v61, %v230_v56  ;;  %v238_v63 = vrot.slane %v113_v50, %v237_v57 }
  0xc6   :  { %v233_v1 = vsel %vm232_vm14, %v231_v62, %v226_v0 }
  0xc7   :  { %v240_v2 = vsel %vm239_vm15, %v238_v63, %v233_v1 }
  0xc8   :  { %242 = vst [vmem:[#allocation5] sm:$0x1] %v240_v2 }
  0xc9   :  { %296 = shalt.err (!%p293_p12)
}
  0xca   :  { %s297_s30 = scalar_lea.hbm %s411_s2, 16 }
  0xcb   :  { %p298_p13 = scmp.ne.s32.totalorder %s411_s2, %s297_s30  ;;  %p301_p0 = scmp.lt.u32.totalorder %s297_s30, %s411_s2 }
  0xcd   :  { %p303_p1 = pnand %p301_p0, %p298_p13 }
  0xcf   :  { %306 = shalt.err (!%p303_p1)
}
  0xd0   :  { %252 = dma.vmem_to_hbm [thread:$0]  %s250_s1, 16, %s411_s2, [#allocation4]  }
  0xd1   :  { %309 = dma.done.wait [#allocation4], 16  }
  0xd2   :  { %310 = vsyncadd [#allocation4], 4294967280 }
  0xd3   :  { %256 = vsyncpa [#allocation3], 1 }
  0xd4   :  { %257 = vsyncpa [#allocation4], 1 }

</bundles_post_ra>
